<compile_context>
chip_gen: v6e
topology: v6e:2x2x1
jax: 0.10.0
libtpu: 0.0.40
codegen_flags: <defaults>
</compile_context>

<pallas_src>
import jax
import jax.numpy as jnp
from jax.experimental import pallas as pl
from jax.experimental.pallas import tpu as pltpu

HIDDEN1 = 128
HIDDEN2 = 64
MAX_BATCH_TILE = 4096         # rows per grid step (multiple of 8 sublanes)
SMALL_BATCH_THRESHOLD = 1024  # below this, plain XLA beats a kernel launch


def mlp_kernel(x_ref, w1_ref, b1_ref, w2_ref, b2_ref, w3_ref, b3_ref, o_ref):
    # x arrives f32 (no wrapper-side HBM cast pass); the bf16 cast happens in
    # VMEM and hides under the tile DMA.  Matmuls run bf16 on the MXU with f32
    # accumulation; bias-add / ReLU stay in f32 (v5e VPU/EUP have no bf16).
    x = x_ref[...].astype(jnp.bfloat16)
    h1 = jnp.dot(x, w1_ref[...], preferred_element_type=jnp.float32) + b1_ref[...]
    h1 = jnp.maximum(h1, 0.0).astype(jnp.bfloat16)
    # TODO(synk): training-mode dropout (p=0.2) would use pltpu.prng_seed +
    # pltpu.stateful_bernoulli with 1/(1-p) scaling; eval-mode forward is identity.
    h2 = jnp.dot(h1, w2_ref[...], preferred_element_type=jnp.float32) + b2_ref[...]
    h2 = jnp.maximum(h2, 0.0).astype(jnp.bfloat16)
    o_ref[...] = (jnp.dot(h2, w3_ref[...], preferred_element_type=jnp.float32)
                  + b3_ref[...]).astype(o_ref.dtype)


def _xla_forward(x, params):
    # Tiny-batch fast path: launch/DMA overhead dominates the kernel below
    # ~1K rows; XLA's fused GEMMs are at least as fast there.  f32 throughout.
    w1, b1, w2, b2, w3, b3 = params
    h1 = jnp.maximum(x @ w1 + b1, 0.0)
    h2 = jnp.maximum(h1 @ w2 + b2, 0.0)
    return h2 @ w3 + b3


def net_forward(x, params, *, block_batch=MAX_BATCH_TILE, force_pallas=False):
    w1, b1, w2, b2, w3, b3 = params
    batch, in_features = x.shape
    out_features = w3.shape[1]

    if not force_pallas and batch < SMALL_BATCH_THRESHOLD:
        return _xla_forward(x, params)

    # Weights to bf16 (tiny, one-time cast); biases f32; x stays f32.
    w1b = w1.astype(jnp.bfloat16)
    w2b = w2.astype(jnp.bfloat16)
    w3b = w3.astype(jnp.bfloat16)
    b1f = b1.astype(jnp.float32)
    b2f = b2.astype(jnp.float32)
    b3f = b3.astype(jnp.float32)

    # Batch tile: power-of-two, >=16, capped so the double-buffered working
    # set stays well inside the default scoped-VMEM limit on every generation.
    tb = min(block_batch, pl.next_power_of_2(max(batch, 1)))
    tb = max(tb, 16)
    batch_pad = pl.cdiv(batch, tb) * tb
    xp = x.astype(jnp.float32)
    if batch_pad != batch:
        xp = jnp.pad(xp, ((0, batch_pad - batch), (0, 0)))
    grid = (batch_pad // tb,)

    flops = 2 * batch_pad * (in_features * HIDDEN1 + HIDDEN1 * HIDDEN2
                             + HIDDEN2 * out_features)
    bytes_accessed = (xp.size * 4
                      + (w1b.size + w2b.size + w3b.size) * 2
                      + (b1f.size + b2f.size + b3f.size) * 4
                      + batch_pad * out_features * 4)

    out = pl.pallas_call(
        mlp_kernel,
        out_shape=jax.ShapeDtypeStruct((batch_pad, out_features), jnp.float32),
        grid=grid,
        in_specs=[
            # streamed per batch tile (f32; cast to bf16 inside the kernel)
            pl.BlockSpec((tb, in_features), lambda i: (i, 0)),
            # weights/biases: constant block index -> VMEM-resident across steps
            pl.BlockSpec((in_features, HIDDEN1), lambda i: (0, 0)),
            pl.BlockSpec((1, HIDDEN1), lambda i: (0, 0)),
            pl.BlockSpec((HIDDEN1, HIDDEN2), lambda i: (0, 0)),
            pl.BlockSpec((1, HIDDEN2), lambda i: (0, 0)),
            pl.BlockSpec((HIDDEN2, out_features), lambda i: (0, 0)),
            pl.BlockSpec((1, out_features), lambda i: (0, 0)),
        ],
        # True-width output (block last dim == full array dim); masked stores
        # are fine -- the store slot is nowhere near binding.
        out_specs=pl.BlockSpec((tb, out_features), lambda i: (i, 0)),
        compiler_params=pltpu.CompilerParams(
            dimension_semantics=("parallel",)),
        cost_estimate=pl.CostEstimate(flops=flops, transcendentals=0,
                                      bytes_accessed=bytes_accessed),
    )(xp, w1b, b1f, w2b, b2f, w3b, b3f)

    if batch_pad != batch:
        out = out[:batch]
    return out


def init_linear(key, in_dim, out_dim):
    # Deterministic init mimicking torch.nn.Linear defaults (uniform bounds).
    kw, kb = jax.random.split(key)
    bound = 1.0 / jnp.sqrt(jnp.float32(in_dim))
    # Stored as [in_dim, out_dim] (transpose of torch's [out, in]) so the
    # kernel computes x @ W directly.
    w = jax.random.uniform(kw, (in_dim, out_dim), jnp.float32, -bound, bound)
    b = jax.random.uniform(kb, (1, out_dim), jnp.float32, -bound, bound)
    return w, b


def reference_forward(x, params):
    # Same numerics as the kernel: bf16 matmul operands, f32 accumulation.
    w1, b1, w2, b2, w3, b3 = params
    h1 = jnp.dot(x.astype(jnp.bfloat16), w1.astype(jnp.bfloat16),
                 preferred_element_type=jnp.float32) + b1
    h1 = jnp.maximum(h1, 0.0)
    h2 = jnp.dot(h1.astype(jnp.bfloat16), w2.astype(jnp.bfloat16),
                 preferred_element_type=jnp.float32) + b2
    h2 = jnp.maximum(h2, 0.0)
    return jnp.dot(h2.astype(jnp.bfloat16), w3.astype(jnp.bfloat16),
                   preferred_element_type=jnp.float32) + b3


if __name__ == "__main__":
    in_features = 11    # red wine quality dataset has 11 features
    out_features = 6

    key = jax.random.PRNGKey(0)
    kx, k1, k2, k3 = jax.random.split(key, 4)

    w1, b1 = init_linear(k1, in_features, HIDDEN1)
    w2, b2 = init_linear(k2, HIDDEN1, HIDDEN2)
    w3, b3 = init_linear(k3, HIDDEN2, out_features)
    params = (w1, b1, w2, b2, w3, b3)

    # force_pallas=True exercises the kernel even below the small-batch
    # threshold; batch=200 additionally exercises the batch-padding + slice path.
    for batch in (8, 200):
        x = jax.random.normal(kx, (batch, in_features), jnp.float32)
        out = net_forward(x, params, force_pallas=True)
        jax.block_until_ready(out)
        ref = reference_forward(x, params)
        assert out.shape == (batch, out_features)
        assert jnp.allclose(out, ref, atol=1e-2, rtol=1e-2), (
            float(jnp.max(jnp.abs(out - ref))))

    print("KERNEL_OK")
</pallas_src>

<mosaic_0001>
module attributes {stable_mosaic.version = 11 : i64} {
  func.func @mlp_kernel(%arg0: i32, %arg1: memref<16x11xf32, #tpu.memory_space<vmem>>, %arg2: memref<11x128xbf16, #tpu.memory_space<vmem>>, %arg3: memref<1x128xf32, #tpu.memory_space<vmem>>, %arg4: memref<128x64xbf16, #tpu.memory_space<vmem>>, %arg5: memref<1x64xf32, #tpu.memory_space<vmem>>, %arg6: memref<64x6xbf16, #tpu.memory_space<vmem>>, %arg7: memref<1x6xf32, #tpu.memory_space<vmem>>, %arg8: memref<16x6xf32, #tpu.memory_space<vmem>>) attributes {dimension_semantics = [#tpu.dimension_semantics<parallel>], iteration_bounds = array<i64: 1>, scalar_prefetch = 0 : i64, scratch_operands = 0 : i64, tpu.core_type = #tpu.core_type<tc>, window_params = [{transform_indices = @transform_0, window_bounds = array<i64: 16, 11>}, {pipeline_mode = #tpu.pipeline_mode<synchronous>, transform_indices = @transform_1, window_bounds = array<i64: 11, 128>}, {pipeline_mode = #tpu.pipeline_mode<synchronous>, transform_indices = @transform_2, window_bounds = array<i64: 1, 128>}, {pipeline_mode = #tpu.pipeline_mode<synchronous>, transform_indices = @transform_3, window_bounds = array<i64: 128, 64>}, {pipeline_mode = #tpu.pipeline_mode<synchronous>, transform_indices = @transform_4, window_bounds = array<i64: 1, 64>}, {pipeline_mode = #tpu.pipeline_mode<synchronous>, transform_indices = @transform_5, window_bounds = array<i64: 64, 6>}, {pipeline_mode = #tpu.pipeline_mode<synchronous>, transform_indices = @transform_6, window_bounds = array<i64: 1, 6>}, {transform_indices = @transform_7, window_bounds = array<i64: 16, 6>}]} {
    %c0 = arith.constant 0 : index
    %c0_0 = arith.constant 0 : index
    %0 = vector.load %arg1[%c0, %c0_0] : memref<16x11xf32, #tpu.memory_space<vmem>>, vector<16x11xf32>
    %1 = arith.truncf %0 : vector<16x11xf32> to vector<16x11xbf16>
    %c0_1 = arith.constant 0 : index
    %c0_2 = arith.constant 0 : index
    %2 = vector.load %arg2[%c0_1, %c0_2] : memref<11x128xbf16, #tpu.memory_space<vmem>>, vector<11x128xbf16>
    %cst = arith.constant dense<0.000000e+00> : vector<16x128xf32>
    %3 = tpu.matmul %1, %2, %cst {dimension_numbers = #tpu.dot_dimension_numbers<[1], [0], [0], [1], [0, 0, 1, 1], [], []>} : vector<16x11xbf16>, vector<11x128xbf16>, vector<16x128xf32> -> vector<16x128xf32>
    %c0_3 = arith.constant 0 : index
    %c0_4 = arith.constant 0 : index
    %4 = vector.load %arg3[%c0_3, %c0_4] : memref<1x128xf32, #tpu.memory_space<vmem>>, vector<1x128xf32>
    %5 = vector.broadcast %4 : vector<1x128xf32> to vector<16x128xf32>
    %6 = arith.addf %3, %5 : vector<16x128xf32>
    %cst_5 = arith.constant 0.000000e+00 : f32
    %7 = vector.broadcast %cst_5 : f32 to vector<16x128xf32>
    %8 = arith.maximumf %6, %7 : vector<16x128xf32>
    %9 = arith.truncf %8 : vector<16x128xf32> to vector<16x128xbf16>
    %c0_6 = arith.constant 0 : index
    %c0_7 = arith.constant 0 : index
    %10 = vector.load %arg4[%c0_6, %c0_7] : memref<128x64xbf16, #tpu.memory_space<vmem>>, vector<128x64xbf16>
    %cst_8 = arith.constant dense<0.000000e+00> : vector<16x64xf32>
    %11 = tpu.matmul %9, %10, %cst_8 {dimension_numbers = #tpu.dot_dimension_numbers<[1], [0], [0], [1], [0, 0, 1, 1], [], []>} : vector<16x128xbf16>, vector<128x64xbf16>, vector<16x64xf32> -> vector<16x64xf32>
    %c0_9 = arith.constant 0 : index
    %c0_10 = arith.constant 0 : index
    %12 = vector.load %arg5[%c0_9, %c0_10] : memref<1x64xf32, #tpu.memory_space<vmem>>, vector<1x64xf32>
    %13 = vector.broadcast %12 : vector<1x64xf32> to vector<16x64xf32>
    %14 = arith.addf %11, %13 : vector<16x64xf32>
    %cst_11 = arith.constant 0.000000e+00 : f32
    %15 = vector.broadcast %cst_11 : f32 to vector<16x64xf32>
    %16 = arith.maximumf %14, %15 : vector<16x64xf32>
    %17 = arith.truncf %16 : vector<16x64xf32> to vector<16x64xbf16>
    %c0_12 = arith.constant 0 : index
    %c0_13 = arith.constant 0 : index
    %18 = vector.load %arg6[%c0_12, %c0_13] : memref<64x6xbf16, #tpu.memory_space<vmem>>, vector<64x6xbf16>
    %cst_14 = arith.constant dense<0.000000e+00> : vector<16x6xf32>
    %19 = tpu.matmul %17, %18, %cst_14 {dimension_numbers = #tpu.dot_dimension_numbers<[1], [0], [0], [1], [0, 0, 1, 1], [], []>} : vector<16x64xbf16>, vector<64x6xbf16>, vector<16x6xf32> -> vector<16x6xf32>
    %c0_15 = arith.constant 0 : index
    %c0_16 = arith.constant 0 : index
    %20 = vector.load %arg7[%c0_15, %c0_16] : memref<1x6xf32, #tpu.memory_space<vmem>>, vector<1x6xf32>
    %21 = vector.broadcast %20 : vector<1x6xf32> to vector<16x6xf32>
    %22 = arith.addf %19, %21 : vector<16x6xf32>
    %c0_17 = arith.constant 0 : index
    %c0_18 = arith.constant 0 : index
    %23 = vector.load %arg8[%c0_17, %c0_18] : memref<16x6xf32, #tpu.memory_space<vmem>>, vector<16x6xf32>
    tpu.vector_store %arg8[%c0_17, %c0_18], %22 {strides = array<i32>} : memref<16x6xf32, #tpu.memory_space<vmem>>, vector<16x6xf32>,
    return
  }
  func.func @transform_0(%arg0: i32) -> (i32, i32) {
    %c0_i32 = arith.constant 0 : i32
    %c0_i32_0 = arith.constant 0 : i32
    return %arg0, %c0_i32 : i32, i32
  }
  func.func @transform_1(%arg0: i32) -> (i32, i32) {
    %c0_i32 = arith.constant 0 : i32
    %c0_i32_0 = arith.constant 0 : i32
    %c0_i32_1 = arith.constant 0 : i32
    return %c0_i32, %c0_i32_0 : i32, i32
  }
  func.func @transform_2(%arg0: i32) -> (i32, i32) {
    %c0_i32 = arith.constant 0 : i32
    %c0_i32_0 = arith.constant 0 : i32
    %c0_i32_1 = arith.constant 0 : i32
    return %c0_i32, %c0_i32_0 : i32, i32
  }
  func.func @transform_3(%arg0: i32) -> (i32, i32) {
    %c0_i32 = arith.constant 0 : i32
    %c0_i32_0 = arith.constant 0 : i32
    %c0_i32_1 = arith.constant 0 : i32
    return %c0_i32, %c0_i32_0 : i32, i32
  }
  func.func @transform_4(%arg0: i32) -> (i32, i32) {
    %c0_i32 = arith.constant 0 : i32
    %c0_i32_0 = arith.constant 0 : i32
    %c0_i32_1 = arith.constant 0 : i32
    return %c0_i32, %c0_i32_0 : i32, i32
  }
  func.func @transform_5(%arg0: i32) -> (i32, i32) {
    %c0_i32 = arith.constant 0 : i32
    %c0_i32_0 = arith.constant 0 : i32
    %c0_i32_1 = arith.constant 0 : i32
    return %c0_i32, %c0_i32_0 : i32, i32
  }
  func.func @transform_6(%arg0: i32) -> (i32, i32) {
    %c0_i32 = arith.constant 0 : i32
    %c0_i32_0 = arith.constant 0 : i32
    %c0_i32_1 = arith.constant 0 : i32
    return %c0_i32, %c0_i32_0 : i32, i32
  }
  func.func @transform_7(%arg0: i32) -> (i32, i32) {
    %c0_i32 = arith.constant 0 : i32
    %c0_i32_0 = arith.constant 0 : i32
    return %arg0, %c0_i32 : i32, i32
  }
}

</mosaic_0001>

<bundles_post_ra>
// kernel: tpu_custom_call.1
= control target key start
LH: loop header
LB: loop body
LE: loop exit
PB: predicated region body
PF: predicated region fallthrough
CT: control target
= control target key end

     0   :  { %vm48_vm0 = vcmask 1044480   ;;  %vm49_vm1 = vcmask 1045504   ;;  %v393_v0 = vmov 0.0   ;;  %v394_v2 = vmov 65535   ;;  %s496_s1 = inlined_call_operand.vmem [shape: bf16[11,128], index: 1, kind: input, shape index: {}]   ;;  %s497_s0 = inlined_call_operand.vmem [shape: f32[16,11], index: 0, kind: input, shape index: {}]   ;;  %s498_s3 = inlined_call_operand.vmem [shape: bf16[128,64], index: 3, kind: input, shape index: {}]   ;;  %s499_s5 = inlined_call_operand.vmem [shape: bf16[64,6], index: 5, kind: input, shape index: {}]   ;;  %s500_s2 = inlined_call_operand.vmem [shape: f32[1,128], index: 2, kind: input, shape index: {}]   ;;  %s501_s4 = inlined_call_operand.vmem [shape: f32[1,64], index: 4, kind: input, shape index: {}]   ;;  %s502_s6 = inlined_call_operand.vmem [shape: f32[1,6], index: 6, kind: input, shape index: {}]   ;;  %s503_s7 = inlined_call_operand.vmem [shape: f32[16,6], index: 7, kind: output, shape index: {}]  }
   0x1   :  { %339 = vmatprep.subr.bf16.mxu0 %v393_v0  ;;  %v380_v1 = vld [vmem:[%s496_s1] sm:$0x3f]   ;;  %345 = vmatprep.subr.bf16.mxu1 %v393_v0  ;;  %v50_v3 = vsel %vm48_vm0, 4294967295, %v394_v2  ;;  %v28_v5 = vld [vmem:[%s497_s0 + $0x8] sm:$0xff]  ;;  %v381_v6 = vld [vmem:[%s498_s3 + $0x38] sm:$0xff]   ;;  %vm395_vm2 = vmmov 0  }
   0x2   :  { %v27_v4 = vld [vmem:[%s497_s0] sm:$0xff]  ;;  %v51_v7 = vsel %vm49_vm1, %v50_v3, 0  ;;  %341 = vmatprep.mubr.msk.bf16.mxu0 %vm395_vm2, %v393_v0  ;;  %v382_v8 = vld [vmem:[%s498_s3 + $0x30] sm:$0xff]   ;;  %361 = vmatprep.mubr.msk.bf16.mxu1 %vm395_vm2, %v393_v0  ;;  %vm44_vm3 = vcmask 89088   ;;  %v383_v11 = vld [vmem:[%s498_s3 + $0x28] sm:$0xff]   ;;  %vm253_vm4 = vcmask 523264  }
   0x3   :  { %v53_v9 = vand.u32 %v380_v1, %v51_v7  ;;  %346 = vmatpush3.bf16.msra.mxu1 %v381_v6  ;;  %v29_v10 = vpack.c.bf16 %v28_v5, %v27_v4  ;;  %v384_v12 = vld [vmem:[%s498_s3 + $0x20] sm:$0xff]   ;;  %v385_v13 = vld [vmem:[%s498_s3 + $0x18] sm:$0xff]   ;;  %v386_v14 = vld [vmem:[%s498_s3 + $0x10] sm:$0xff]   ;;  %vm298_vm5 = vcmask 48128  }
   0x4   :  { %347 = vmatprep.subr.bf16.mxu1 %v393_v0  ;;  %v387_v15 = vld [vmem:[%s498_s3 + $0x8] sm:$0xff]   ;;  %v388_v16 = vld [vmem:[%s498_s3] sm:$0xff]   ;;  %v389_v17 = vld [vmem:[%s499_s5 + $0x18] sm:$0xff]  }
   0x5   :  { %340 = vmatpush3.bf16.msra.mxu0 %v53_v9  ;;  %v305_v18 = vld [vmem:[%s500_s2] ss:$0 sm:$0xff]  ;;  %v390_v28 = vld [vmem:[%s499_s5 + $0x10] sm:$0xff]   ;;  %v391_v29 = vld [vmem:[%s499_s5 + $0x8] sm:$0xff]  }
   0x6   :  { %365 = vmatprep.subr.bf16.mxu0 %v393_v0  ;;  %v392_v30 = vld [vmem:[%s499_s5] sm:$0xff]  }
   0x7   :  { %348 = vmatpush3.bf16.msra.mxu1 %v382_v8  ;;  %v308_v31 = vld [vmem:[%s501_s4] ss:$0 sm:$0xff] }
   0x8   :  { %342 = vmatmul.mubr.msk.bf16.vlgmr.msra.gmra.mxu0 %vm44_vm3, %v29_v10  ;;  %349 = vmatprep.subr.bf16.mxu1 %v393_v0  ;;  %v317_v41 = vld [vmem:[%s502_s6] ss:$0 sm:$0xff] }
   0x9   :  { %373 = vmatprep.mubr.msk.bf16.mxu0 %vm395_vm2, %v393_v0  ;;  %366 = vmatpush3.bf16.msra.mxu0 %v389_v17 }
   0xa   :  { %367 = vmatprep.subr.bf16.mxu0 %v393_v0 }
   0xb   :  { %350 = vmatpush3.bf16.msra.mxu1 %v383_v11 }
   0xc   :  { %351 = vmatprep.subr.bf16.mxu1 %v393_v0 }
   0xd   :  { %368 = vmatpush3.bf16.msra.mxu0 %v390_v28 }
   0xe   :  { %369 = vmatprep.subr.bf16.mxu0 %v393_v0 }
   0xf   :  { %352 = vmatpush3.bf16.msra.mxu1 %v384_v12 }
  0x10   :  { %353 = vmatprep.subr.bf16.mxu1 %v393_v0 }
  0x11   :  { %370 = vmatpush3.bf16.msra.mxu0 %v391_v29 }
  0x12   :  { %371 = vmatprep.subr.bf16.mxu0 %v393_v0 }
  0x13   :  { %354 = vmatpush3.bf16.msra.mxu1 %v385_v13 }
  0x14   :  { %355 = vmatprep.subr.bf16.mxu1 %v393_v0 }
  0x15   :  { %372 = vmatpush3.bf16.msra.mxu0 %v392_v30 }
  0x17   :  { %356 = vmatpush3.bf16.msra.mxu1 %v386_v14 }
  0x18   :  { %357 = vmatprep.subr.bf16.mxu1 %v393_v0 }
  0x1b   :  { %358 = vmatpush3.bf16.msra.mxu1 %v387_v15 }
  0x1c   :  { %359 = vmatprep.subr.bf16.mxu1 %v393_v0 }
  0x1f   :  { %360 = vmatpush3.bf16.msra.mxu1 %v388_v16 }
  0xc8   :  { %v89_v19 = vpop.f32.mrf.mxu0 }
  0xc9   :  { %v90_v21 = vadd.f32 %v305_v18, %v89_v19 }
  0xca   :  { %v343_v20 = vpop.f32.mrf.mxu0 }
  0xcb   :  { %v96_v25 = vmax.f32 %v90_v21, 0.0 }
  0xcc   :  { %v92_v22 = vpop.f32.mrf.mxu0 }
  0xcd   :  { %v93_v23 = vadd.f32 %v305_v18, %v92_v22 }
  0xce   :  { %v344_v24 = vpop.f32.mrf.mxu0 }
  0xcf   :  { %v97_v26 = vmax.f32 %v93_v23, 0.0 }
  0xd1   :  { %v98_v27 = vpack.c.bf16 %v97_v26, %v96_v25 }
  0xd3   :  { %362 = vmatmul.mubr.bf16.vlgmr.msra.gmra.mxu1 %v98_v27 }
 0x193   :  { %v204_v32 = vpop.f32.mrf.mxu1 }
 0x194   :  { %v205_v34 = vadd.f32 %v308_v31, %v204_v32 }
 0x195   :  { %v363_v33 = vpop.f32.mrf.mxu1 }
 0x196   :  { %v211_v38 = vmax.f32 %v205_v34, 0.0 }
 0x197   :  { %v207_v35 = vpop.f32.mrf.mxu1 }
 0x198   :  { %v208_v36 = vadd.f32 %v308_v31, %v207_v35 }
 0x199   :  { %v364_v37 = vpop.f32.mrf.mxu1 }
 0x19a   :  { %v212_v39 = vmax.f32 %v208_v36, 0.0 }
 0x19c   :  { %v213_v40 = vpack.c.bf16 %v212_v39, %v211_v38 }
 0x19e   :  { %374 = vmatmul.mubr.msk.bf16.vlgmr.msra.gmra.mxu0 %vm253_vm4, %v213_v40 }
 0x25e   :  { %v291_v42 = vpop.f32.mrf.mxu0 }
 0x25f   :  { %v292_v43 = vadd.f32 %v317_v41, %v291_v42 }
 0x260   :  { %v375_v44 = vpop.f32.mrf.mxu0 }
 0x261   :  { %299 = vst.msk [vmem:[%s503_s7] sm:$0xff] %vm298_vm5, %v292_v43 }
 0x262   :  { %v294_v45 = vpop.f32.mrf.mxu0 }
 0x263   :  { %v295_v46 = vadd.f32 %v317_v41, %v294_v45 }
 0x264   :  { %v376_v47 = vpop.f32.mrf.mxu0 }
 0x265   :  { %300 = vst.msk [vmem:[%s503_s7 + $0x8] sm:$0xff] %vm298_vm5, %v295_v46 }

</bundles_post_ra>
